<compile_context>
chip_gen: v5e
topology: v5e:2x2
jax: 0.10.0
libtpu: 0.0.40
codegen_flags: <defaults>
</compile_context>

<pallas_src>
import functools
import jax
import jax.numpy as jnp
from jax.experimental import pallas as pl
from jax.experimental.pallas import tpu as pltpu


def next_power_of2(n: int) -> int:
    return 1 << (int(n) - 1).bit_length()


# ----------------------------------------------------------------------------- #
# Pallas kernel: forward pass for one tile of B_TILE batch elements.
# Layout: channels on sublanes, (batch x per-batch time slot) on lanes.
#   stage-1 slot = 32 lanes/batch (length-30 activations + pad/spare)
#   stage-2 slot = 16 lanes/batch (length-15 activations + spare)
# ----------------------------------------------------------------------------- #
def tcresnet_kernel(
    x_ref,      # (C_in, B*S1)     packed input, f32
    w1_ref,     # (C1, K1*C_in)    input conv weight (im2col layout), bf16
    wa_ref,     # (2*CB, KB*C1)    fused [conv-a ; downsample] weight (BN folded), bf16
    wb_ref,     # (CB, KB*CB)      conv-b weight (BN scale folded), bf16
    sel_ref,    # (B*S1, B*S2)     stride-2 selection (block-diag over batch), bf16
    pool_ref,   # (B*S2, B)        per-batch sum / next_pow2(L2), bf16
    wfc_ref,    # (n_labels, CB)   final Linear weight, bf16
    sh_ref,     # (3, CB, 1)       BN shifts [conv-a, conv-b, downsample], f32
    o_ref,      # (1, n_labels, B)
    *,
    clip_val: float,
    dims: dict,
):
    C1, CB = dims["c1"], dims["cb"]
    K1, KB = dims["k1"], dims["kb"]
    S1, S2 = dims["slot1"], dims["slot2"]
    W1, W2 = dims["lanes1"], dims["lanes2"]

    x = x_ref[...]                                               # (C_in, W1) f32

    # ---- input conv (stride 1, valid): im2col via lane rolls + one MXU matmul ----
    x_taps = [x] + [pltpu.roll(x, shift=W1 - k, axis=1) for k in range(1, K1)]
    x_im = jnp.concatenate(x_taps, axis=0).astype(jnp.bfloat16)  # (K1*C_in, W1)
    y1 = jnp.dot(w1_ref[...], x_im, preferred_element_type=jnp.float32)   # (C1, W1)

    # ---- left zero-pad y1 by 1 inside each batch slot (pad=1 for k=3 convs) ----
    lane1 = jax.lax.broadcasted_iota(jnp.int32, (C1, W1), 1) % S1
    ypad = jnp.where(lane1 == 0, 0.0, pltpu.roll(y1, shift=1, axis=1))    # (C1, W1)

    # ---- fused [block conv-a (k=3) ; downsample 1x1] at stride-1 resolution ----
    a_taps = [ypad] + [pltpu.roll(ypad, shift=W1 - k, axis=1) for k in range(1, KB)]
    a_im = jnp.concatenate(a_taps, axis=0).astype(jnp.bfloat16)  # (KB*C1, W1)
    st_a = jnp.dot(wa_ref[...], a_im, preferred_element_type=jnp.float32)  # (2*CB, W1)
    # shared stride-2 subsampling of both paths with one selection matmul
    st_a = jnp.dot(st_a.astype(jnp.bfloat16), sel_ref[...],
                   preferred_element_type=jnp.float32)           # (2*CB, W2)

    ya = jnp.clip(st_a[:CB] + sh_ref[0], 0.0, clip_val)          # BN1 + Hardtanh(0, clip)
    ds = jnp.maximum(st_a[CB:] + sh_ref[2], 0.0)                 # BN_ds + ReLU

    # ---- block conv-b (stride 1, pad 1) on ya, slot width S2 ----
    lane2 = jax.lax.broadcasted_iota(jnp.int32, (CB, W2), 1) % S2
    tap_l = jnp.where(lane2 == 0, 0.0, pltpu.roll(ya, shift=1, axis=1))       # ya[t-1]
    tap_r = jnp.where(lane2 >= S2 - 2, 0.0, pltpu.roll(ya, shift=W2 - 1, axis=1))  # ya[t+1]
    b_im = jnp.concatenate([tap_l, ya, tap_r], axis=0).astype(jnp.bfloat16)   # (KB*CB, W2)
    yb = jnp.dot(wb_ref[...], b_im, preferred_element_type=jnp.float32) + sh_ref[1]

    # ---- residual add + Hardtanh(0, clip) ----
    res = jnp.clip(yb + ds, 0.0, clip_val)                       # (CB, W2)

    # ---- ApproximateGlobalAveragePooling1D (sum / next_pow2) + Linear ----
    # TODO(synk): nn.Dropout is identity in inference mode; no RNG masking applied.
    pooled = jnp.dot(res.astype(jnp.bfloat16), pool_ref[...],
                     preferred_element_type=jnp.float32)         # (CB, B)
    logits = jnp.dot(wfc_ref[...], pooled.astype(jnp.bfloat16),
                     preferred_element_type=jnp.float32)         # (n_labels, B)
    o_ref[0] = logits


# ----------------------------------------------------------------------------- #
# Wrapper-side parameter preparation (BN folding, im2col weight layout, sel/pool)
# ----------------------------------------------------------------------------- #
def build_kernel_params(params, dims, b_tile, pool_div):
    C_in, C1, CB = dims["c_in"], dims["c1"], dims["cb"]
    K1, KB = dims["k1"], dims["kb"]
    S1, S2, L2 = dims["slot1"], dims["slot2"], dims["l2"]
    bf16 = jnp.bfloat16

    # input conv: (C1, C_in, K1) -> (C1, K1*C_in), column index = k*C_in + c
    w1 = params["w1"].transpose(0, 2, 1).reshape(C1, K1 * C_in)

    # conv-a with BN1 scale folded into its output rows
    wa = (params["wc1"] * params["s1"][:, :, None]).transpose(0, 2, 1).reshape(CB, KB * C1)
    # downsample 1x1 (BN_ds scale folded), wired onto the tap-1 block of the im2col
    wd = params["wd"][:, :, 0] * params["sd"]                    # (CB, C1)
    wd_big = jnp.zeros((CB, KB * C1), jnp.float32).at[:, C1:2 * C1].set(wd)
    wa_fused = jnp.concatenate([wa, wd_big], axis=0)             # (2*CB, KB*C1)

    # conv-b with BN2 scale folded
    wb = (params["wc2"] * params["s2"][:, :, None]).transpose(0, 2, 1).reshape(CB, KB * CB)

    # stride-2 selection matrix, block-diagonal over the b_tile batch slots
    b_idx = jnp.repeat(jnp.arange(b_tile), L2)
    t_idx = jnp.tile(jnp.arange(L2), b_tile)
    sel = jnp.zeros((b_tile * S1, b_tile * S2), jnp.float32)
    sel = sel.at[b_idx * S1 + 2 * t_idx, b_idx * S2 + t_idx].set(1.0)

    # per-batch sum over the L2 valid lanes, divided by next_pow2(L2)
    pmat = jnp.zeros((b_tile * S2, b_tile), jnp.float32)
    pmat = pmat.at[b_idx * S2 + t_idx, b_idx].set(1.0 / pool_div)

    shifts = jnp.stack([params["sh1"], params["sh2"], params["shd"]], axis=0)  # (3, CB, 1)

    return dict(
        w1=w1.astype(bf16), wa=wa_fused.astype(bf16), wb=wb.astype(bf16),
        sel=sel.astype(bf16), pool=pmat.astype(bf16),
        wfc=params["wfc"].astype(bf16), shifts=shifts.astype(jnp.float32),
    )


def tcresnet_forward(x, params, clip_val, pool_div, dims, b_tile=4):
    N, C_in, L_in = x.shape
    assert C_in == dims["c_in"] and L_in == dims["l_in"]
    assert dims["slot1"] == L_in and dims["slot1"] == 2 * dims["slot2"]
    assert dims["k1"] == 3 and dims["kb"] == 3
    n_labels = dims["n_labels"]

    kp = build_kernel_params(params, dims, b_tile, pool_div)

    # pack batch onto the lane axis: (N, C, L) -> (C, N_pad * L)
    n_pad = -(-N // b_tile) * b_tile
    if n_pad != N:
        x = jnp.concatenate([x, jnp.zeros((n_pad - N, C_in, L_in), x.dtype)], axis=0)
    x_packed = x.transpose(1, 0, 2).reshape(C_in, n_pad * L_in)

    g = n_pad // b_tile
    lanes1 = b_tile * dims["slot1"]
    lanes2 = b_tile * dims["slot2"]
    kdims = dict(dims, lanes1=lanes1, lanes2=lanes2)

    def full_spec(arr):
        nd = arr.ndim
        return pl.BlockSpec(arr.shape, lambda i, _n=nd: (0,) * _n)

    kernel = functools.partial(tcresnet_kernel, clip_val=clip_val, dims=kdims)

    out = pl.pallas_call(
        kernel,
        out_shape=jax.ShapeDtypeStruct((g, n_labels, b_tile), jnp.float32),
        grid_spec=pltpu.PrefetchScalarGridSpec(
            num_scalar_prefetch=0,
            grid=(g,),
            in_specs=[
                pl.BlockSpec((C_in, lanes1), lambda i: (0, i)),
                full_spec(kp["w1"]),
                full_spec(kp["wa"]),
                full_spec(kp["wb"]),
                full_spec(kp["sel"]),
                full_spec(kp["pool"]),
                full_spec(kp["wfc"]),
                full_spec(kp["shifts"]),
            ],
            out_specs=pl.BlockSpec((1, n_labels, b_tile), lambda i: (i, 0, 0)),
        ),
        compiler_params=pltpu.CompilerParams(dimension_semantics=("parallel",)),
    )(
        x_packed, kp["w1"], kp["wa"], kp["wb"], kp["sel"],
        kp["pool"], kp["wfc"], kp["shifts"],
    )

    # (g, n_labels, b_tile) -> (N, n_labels)
    logits = out.transpose(0, 2, 1).reshape(n_pad, n_labels)[:N]
    return logits


# ----------------------------------------------------------------------------- #
# Pure-JAX float32 reference (module semantics; for correctness check)
# ----------------------------------------------------------------------------- #
def _conv1d(x, w, stride, padding):
    return jax.lax.conv_general_dilated(
        x, w, (stride,), [(padding, padding)], dimension_numbers=("NCH", "OIH", "NCH")
    )


def reference_forward(x, params, clip_val, pool_div):
    y1 = _conv1d(x, params["w1"], 1, 0)
    ya = _conv1d(y1, params["wc1"], 2, 1)
    ya = ya * params["s1"][None] + params["sh1"][None]
    ya = jnp.clip(ya, 0.0, clip_val)
    yb = _conv1d(ya, params["wc2"], 1, 1)
    yb = yb * params["s2"][None] + params["sh2"][None]
    xd = _conv1d(y1, params["wd"], 2, 0)
    xd = xd * params["sd"][None] + params["shd"][None]
    xd = jnp.maximum(xd, 0.0)
    res = jnp.clip(yb + xd, 0.0, clip_val)
    feat = jnp.sum(res, axis=2, keepdims=True) / pool_div
    feat = feat.reshape(feat.shape[0], -1)
    return feat @ params["wfc"].T


# ----------------------------------------------------------------------------- #
if __name__ == "__main__":
    # --- architecture hyper-parameters (synthetic config) ---
    N = 6
    C_IN = 8          # config['height']
    L_IN = 32         # config['width']
    C1 = 16           # conv1_output_channels
    K1 = 3            # conv1_size, conv1_stride = 1
    CB = 24           # block1_output_channels
    KB = 3            # block1_conv_size, block1_stride = 2, dilation = 1
    N_LABELS = 10
    CLIP = 20.0       # clipping_value
    B_TILE = 4        # batch elements packed per grid step (4 * 32 = 128 lanes)

    L1 = L_IN - K1 + 1                       # 30 (input conv, no padding)
    PAD = KB // 2                            # 1
    L2 = (L1 + 2 * PAD - KB) // 2 + 1        # 15 (stride-2 output length)
    POOL_DIV = float(next_power_of2(L2))     # 16
    SLOT1 = L_IN                             # 32 lanes / batch in stage 1
    SLOT2 = SLOT1 // 2                       # 16 lanes / batch in stage 2
    assert SLOT1 >= L1 + 2 and SLOT2 >= L2 + 1

    dims = dict(
        c_in=C_IN, l_in=L_IN, c1=C1, k1=K1, l1=L1,
        cb=CB, kb=KB, l2=L2, slot1=SLOT1, slot2=SLOT2, n_labels=N_LABELS,
    )

    # --- deterministic parameters ---
    key = jax.random.PRNGKey(0)
    ks = jax.random.split(key, 12)

    def rnd(k, shape, scale=0.1):
        return scale * jax.random.normal(k, shape, dtype=jnp.float32)

    eps = 1e-5

    def bn_fold(kg, kb_, km, kv, c):
        gamma = 1.0 + 0.1 * jax.random.normal(kg, (c,), dtype=jnp.float32)
        beta = 0.1 * jax.random.normal(kb_, (c,), dtype=jnp.float32)
        rm = 0.05 * jax.random.normal(km, (c,), dtype=jnp.float32)
        rv = 1.0 + 0.1 * jax.random.uniform(kv, (c,), dtype=jnp.float32)
        scale = gamma / jnp.sqrt(rv + eps)
        shift = beta - rm * scale
        return scale.reshape(c, 1), shift.reshape(c, 1)

    bn_keys = jax.random.split(ks[11], 12)
    s1, sh1 = bn_fold(*bn_keys[0:4], CB)
    s2, sh2 = bn_fold(*bn_keys[4:8], CB)
    sd, shd = bn_fold(*bn_keys[8:12], CB)

    params = dict(
        w1=rnd(ks[0], (C1, C_IN, K1)),
        wc1=rnd(ks[1], (CB, C1, KB)),
        wc2=rnd(ks[2], (CB, CB, KB)),
        wd=rnd(ks[3], (CB, C1, 1)),
        wfc=rnd(ks[4], (N_LABELS, CB)),
        s1=s1, sh1=sh1, s2=s2, sh2=sh2, sd=sd, shd=shd,
    )

    # --- input ---
    x = jax.random.normal(ks[5], (N, C_IN, L_IN), dtype=jnp.float32)

    # --- run kernel ---
    out = tcresnet_forward(x, params, CLIP, POOL_DIV, dims, b_tile=B_TILE)
    out = jax.block_until_ready(out)

    # --- correctness check vs float32 reference ---
    # (kernel uses bf16 MXU operands with f32 accumulation -> loosened tolerance)
    ref = reference_forward(x, params, CLIP, POOL_DIV)
    assert out.shape == (N, N_LABELS)
    assert bool(jnp.all(jnp.isfinite(out)))
    assert jnp.allclose(out, ref, atol=2e-2, rtol=2e-2), (out, ref)

    print("KERNEL_OK")
</pallas_src>

<mosaic_0001>
module attributes {stable_mosaic.version = 11 : i64} {
  func.func @tcresnet_kernel(%arg0: i32, %arg1: memref<8x128xf32, #tpu.memory_space<vmem>>, %arg2: memref<16x24xbf16, #tpu.memory_space<vmem>>, %arg3: memref<48x48xbf16, #tpu.memory_space<vmem>>, %arg4: memref<24x72xbf16, #tpu.memory_space<vmem>>, %arg5: memref<128x64xbf16, #tpu.memory_space<vmem>>, %arg6: memref<64x4xbf16, #tpu.memory_space<vmem>>, %arg7: memref<10x24xbf16, #tpu.memory_space<vmem>>, %arg8: memref<3x24x1xf32, #tpu.memory_space<vmem>>, %arg9: memref<1x10x4xf32, #tpu.memory_space<vmem>>) attributes {dimension_semantics = [#tpu.dimension_semantics<parallel>], iteration_bounds = array<i64: 2>, scalar_prefetch = 0 : i64, scratch_operands = 0 : i64, tpu.core_type = #tpu.core_type<tc>, window_params = [{transform_indices = @transform_0, window_bounds = array<i64: 8, 128>}, {pipeline_mode = #tpu.pipeline_mode<synchronous>, transform_indices = @transform_1, window_bounds = array<i64: 16, 24>}, {pipeline_mode = #tpu.pipeline_mode<synchronous>, transform_indices = @transform_2, window_bounds = array<i64: 48, 48>}, {pipeline_mode = #tpu.pipeline_mode<synchronous>, transform_indices = @transform_3, window_bounds = array<i64: 24, 72>}, {pipeline_mode = #tpu.pipeline_mode<synchronous>, transform_indices = @transform_4, window_bounds = array<i64: 128, 64>}, {pipeline_mode = #tpu.pipeline_mode<synchronous>, transform_indices = @transform_5, window_bounds = array<i64: 64, 4>}, {pipeline_mode = #tpu.pipeline_mode<synchronous>, transform_indices = @transform_6, window_bounds = array<i64: 10, 24>}, {pipeline_mode = #tpu.pipeline_mode<synchronous>, transform_indices = @transform_7, window_bounds = array<i64: 3, 24, 1>}, {transform_indices = @transform_8, window_bounds = array<i64: 1, 10, 4>}]} {
    %c0 = arith.constant 0 : index
    %c0_0 = arith.constant 0 : index
    %0 = vector.load %arg1[%c0, %c0_0] : memref<8x128xf32, #tpu.memory_space<vmem>>, vector<8x128xf32>
    %c127_i32 = arith.constant 127 : i32
    %1 = tpu.dynamic_rotate %0 by %c127_i32 dim 1 : vector<8x128xf32>, i32 -> vector<8x128xf32>
    %c126_i32 = arith.constant 126 : i32
    %2 = tpu.dynamic_rotate %0 by %c126_i32 dim 1 : vector<8x128xf32>, i32 -> vector<8x128xf32>
    %3 = tpu.concatenate %0, %1, %2 in 0 : vector<8x128xf32>, vector<8x128xf32>, vector<8x128xf32> -> vector<24x128xf32>
    %4 = arith.truncf %3 : vector<24x128xf32> to vector<24x128xbf16>
    %c0_1 = arith.constant 0 : index
    %c0_2 = arith.constant 0 : index
    %5 = vector.load %arg2[%c0_1, %c0_2] : memref<16x24xbf16, #tpu.memory_space<vmem>>, vector<16x24xbf16>
    %cst = arith.constant dense<0.000000e+00> : vector<16x128xf32>
    %6 = tpu.matmul %5, %4, %cst {dimension_numbers = #tpu.dot_dimension_numbers<[1], [0], [0], [1], [0, 0, 1, 1], [], []>} : vector<16x24xbf16>, vector<24x128xbf16>, vector<16x128xf32> -> vector<16x128xf32>
    %7 = tpu.iota {dimensions = array<i32: 1>} : vector<16x128xi32>
    %c32_i32 = arith.constant 32 : i32
    %c0_i32 = arith.constant 0 : i32
    %8 = arith.cmpi eq, %c32_i32, %c0_i32 : i32
    %c1_i32 = arith.constant 1 : i32
    %9 = arith.select %8, %c1_i32, %c32_i32 : i32
    %10 = vector.broadcast %9 : i32 to vector<16x128xi32>
    %11 = arith.remsi %7, %10 : vector<16x128xi32>
    %c0_i32_3 = arith.constant 0 : i32
    %12 = vector.broadcast %c0_i32_3 : i32 to vector<16x128xi32>
    %13 = arith.cmpi ne, %11, %12 : vector<16x128xi32>
    %c0_i32_4 = arith.constant 0 : i32
    %14 = vector.broadcast %c0_i32_4 : i32 to vector<16x128xi32>
    %15 = arith.cmpi slt, %11, %14 : vector<16x128xi32>
    %c0_i32_5 = arith.constant 0 : i32
    %16 = arith.cmpi slt, %9, %c0_i32_5 : i32
    %17 = vector.broadcast %16 : i1 to vector<16x128xi1>
    %18 = vector.broadcast %17 : vector<16x128xi1> to vector<16x128xi1>
    %19 = arith.xori %15, %18 : vector<16x128xi1>
    %20 = arith.andi %19, %13 : vector<16x128xi1>
    %21 = vector.broadcast %9 : i32 to vector<16x128xi32>
    %22 = arith.addi %11, %21 : vector<16x128xi32>
    %23 = arith.select %20, %22, %11 : vector<16x128xi1>, vector<16x128xi32>
    %c0_i32_6 = arith.constant 0 : i32
    %24 = vector.broadcast %c0_i32_6 : i32 to vector<16x128xi32>
    %25 = arith.cmpi eq, %23, %24 : vector<16x128xi32>
    %c1_i32_7 = arith.constant 1 : i32
    %26 = tpu.dynamic_rotate %6 by %c1_i32_7 dim 1 : vector<16x128xf32>, i32 -> vector<16x128xf32>
    %cst_8 = arith.constant 0.000000e+00 : f32
    %27 = vector.broadcast %cst_8 : f32 to vector<16x128xf32>
    %28 = arith.select %25, %27, %26 : vector<16x128xi1>, vector<16x128xf32>
    %c127_i32_9 = arith.constant 127 : i32
    %29 = tpu.dynamic_rotate %28 by %c127_i32_9 dim 1 : vector<16x128xf32>, i32 -> vector<16x128xf32>
    %c126_i32_10 = arith.constant 126 : i32
    %30 = tpu.dynamic_rotate %28 by %c126_i32_10 dim 1 : vector<16x128xf32>, i32 -> vector<16x128xf32>
    %31 = tpu.concatenate %28, %29, %30 in 0 : vector<16x128xf32>, vector<16x128xf32>, vector<16x128xf32> -> vector<48x128xf32>
    %32 = arith.truncf %31 : vector<48x128xf32> to vector<48x128xbf16>
    %c0_11 = arith.constant 0 : index
    %c0_12 = arith.constant 0 : index
    %33 = vector.load %arg3[%c0_11, %c0_12] : memref<48x48xbf16, #tpu.memory_space<vmem>>, vector<48x48xbf16>
    %cst_13 = arith.constant dense<0.000000e+00> : vector<48x128xf32>
    %34 = tpu.matmul %33, %32, %cst_13 {dimension_numbers = #tpu.dot_dimension_numbers<[1], [0], [0], [1], [0, 0, 1, 1], [], []>} : vector<48x48xbf16>, vector<48x128xbf16>, vector<48x128xf32> -> vector<48x128xf32>
    %35 = arith.truncf %34 : vector<48x128xf32> to vector<48x128xbf16>
    %c0_14 = arith.constant 0 : index
    %c0_15 = arith.constant 0 : index
    %36 = vector.load %arg5[%c0_14, %c0_15] : memref<128x64xbf16, #tpu.memory_space<vmem>>, vector<128x64xbf16>
    %cst_16 = arith.constant dense<0.000000e+00> : vector<48x64xf32>
    %37 = tpu.matmul %35, %36, %cst_16 {dimension_numbers = #tpu.dot_dimension_numbers<[1], [0], [0], [1], [0, 0, 1, 1], [], []>} : vector<48x128xbf16>, vector<128x64xbf16>, vector<48x64xf32> -> vector<48x64xf32>
    %38 = vector.extract_strided_slice %37 {offsets = [0, 0], sizes = [24, 64], strides = [1, 1]} : vector<48x64xf32> to vector<24x64xf32>
    %c0_17 = arith.constant 0 : index
    %c0_18 = arith.constant 0 : index
    %c0_19 = arith.constant 0 : index
    %39 = vector.load %arg8[%c0_17, %c0_18, %c0_19] : memref<3x24x1xf32, #tpu.memory_space<vmem>>, vector<1x24x1xf32>
    %40 = vector.shape_cast %39 : vector<1x24x1xf32> to vector<24x1xf32>
    %41 = vector.broadcast %40 : vector<24x1xf32> to vector<24x64xf32>
    %42 = arith.addf %38, %41 : vector<24x64xf32>
    %cst_20 = arith.constant 0.000000e+00 : f32
    %cst_21 = arith.constant 2.000000e+01 : f32
    %43 = vector.broadcast %cst_20 : f32 to vector<24x64xf32>
    %44 = arith.maximumf %43, %42 : vector<24x64xf32>
    %45 = vector.broadcast %cst_21 : f32 to vector<24x64xf32>
    %46 = arith.minimumf %45, %44 : vector<24x64xf32>
    %47 = vector.extract_strided_slice %37 {offsets = [24, 0], sizes = [24, 64], strides = [1, 1]} : vector<48x64xf32> to vector<24x64xf32>
    %c2 = arith.constant 2 : index
    %c0_22 = arith.constant 0 : index
    %c0_23 = arith.constant 0 : index
    %48 = vector.load %arg8[%c2, %c0_22, %c0_23] : memref<3x24x1xf32, #tpu.memory_space<vmem>>, vector<1x24x1xf32>
    %49 = vector.shape_cast %48 : vector<1x24x1xf32> to vector<24x1xf32>
    %50 = vector.broadcast %49 : vector<24x1xf32> to vector<24x64xf32>
    %51 = arith.addf %47, %50 : vector<24x64xf32>
    %cst_24 = arith.constant 0.000000e+00 : f32
    %52 = vector.broadcast %cst_24 : f32 to vector<24x64xf32>
    %53 = arith.maximumf %51, %52 : vector<24x64xf32>
    %54 = tpu.iota {dimensions = array<i32: 1>} : vector<24x64xi32>
    %c16_i32 = arith.constant 16 : i32
    %c0_i32_25 = arith.constant 0 : i32
    %55 = arith.cmpi eq, %c16_i32, %c0_i32_25 : i32
    %c1_i32_26 = arith.constant 1 : i32
    %56 = arith.select %55, %c1_i32_26, %c16_i32 : i32
    %57 = vector.broadcast %56 : i32 to vector<24x64xi32>
    %58 = arith.remsi %54, %57 : vector<24x64xi32>
    %c0_i32_27 = arith.constant 0 : i32
    %59 = vector.broadcast %c0_i32_27 : i32 to vector<24x64xi32>
    %60 = arith.cmpi ne, %58, %59 : vector<24x64xi32>
    %c0_i32_28 = arith.constant 0 : i32
    %61 = vector.broadcast %c0_i32_28 : i32 to vector<24x64xi32>
    %62 = arith.cmpi slt, %58, %61 : vector<24x64xi32>
    %c0_i32_29 = arith.constant 0 : i32
    %63 = arith.cmpi slt, %56, %c0_i32_29 : i32
    %64 = vector.broadcast %63 : i1 to vector<24x64xi1>
    %65 = vector.broadcast %64 : vector<24x64xi1> to vector<24x64xi1>
    %66 = arith.xori %62, %65 : vector<24x64xi1>
    %67 = arith.andi %66, %60 : vector<24x64xi1>
    %68 = vector.broadcast %56 : i32 to vector<24x64xi32>
    %69 = arith.addi %58, %68 : vector<24x64xi32>
    %70 = arith.select %67, %69, %58 : vector<24x64xi1>, vector<24x64xi32>
    %c0_i32_30 = arith.constant 0 : i32
    %71 = vector.broadcast %c0_i32_30 : i32 to vector<24x64xi32>
    %72 = arith.cmpi eq, %70, %71 : vector<24x64xi32>
    %c1_i32_31 = arith.constant 1 : i32
    %73 = tpu.dynamic_rotate %46 by %c1_i32_31 dim 1 : vector<24x64xf32>, i32 -> vector<24x64xf32>
    %cst_32 = arith.constant 0.000000e+00 : f32
    %74 = vector.broadcast %cst_32 : f32 to vector<24x64xf32>
    %75 = arith.select %72, %74, %73 : vector<24x64xi1>, vector<24x64xf32>
    %c14_i32 = arith.constant 14 : i32
    %76 = vector.broadcast %c14_i32 : i32 to vector<24x64xi32>
    %77 = arith.cmpi sge, %70, %76 : vector<24x64xi32>
    %c63_i32 = arith.constant 63 : i32
    %78 = tpu.dynamic_rotate %46 by %c63_i32 dim 1 : vector<24x64xf32>, i32 -> vector<24x64xf32>
    %cst_33 = arith.constant 0.000000e+00 : f32
    %79 = vector.broadcast %cst_33 : f32 to vector<24x64xf32>
    %80 = arith.select %77, %79, %78 : vector<24x64xi1>, vector<24x64xf32>
    %81 = tpu.concatenate %75, %46, %80 in 0 : vector<24x64xf32>, vector<24x64xf32>, vector<24x64xf32> -> vector<72x64xf32>
    %82 = arith.truncf %81 : vector<72x64xf32> to vector<72x64xbf16>
    %c0_34 = arith.constant 0 : index
    %c0_35 = arith.constant 0 : index
    %83 = vector.load %arg4[%c0_34, %c0_35] : memref<24x72xbf16, #tpu.memory_space<vmem>>, vector<24x72xbf16>
    %cst_36 = arith.constant dense<0.000000e+00> : vector<24x64xf32>
    %84 = tpu.matmul %83, %82, %cst_36 {dimension_numbers = #tpu.dot_dimension_numbers<[1], [0], [0], [1], [0, 0, 1, 1], [], []>} : vector<24x72xbf16>, vector<72x64xbf16>, vector<24x64xf32> -> vector<24x64xf32>
    %c1 = arith.constant 1 : index
    %c0_37 = arith.constant 0 : index
    %c0_38 = arith.constant 0 : index
    %85 = vector.load %arg8[%c1, %c0_37, %c0_38] : memref<3x24x1xf32, #tpu.memory_space<vmem>>, vector<1x24x1xf32>
    %86 = vector.shape_cast %85 : vector<1x24x1xf32> to vector<24x1xf32>
    %87 = vector.broadcast %86 : vector<24x1xf32> to vector<24x64xf32>
    %88 = arith.addf %84, %87 : vector<24x64xf32>
    %89 = arith.addf %88, %53 : vector<24x64xf32>
    %cst_39 = arith.constant 0.000000e+00 : f32
    %cst_40 = arith.constant 2.000000e+01 : f32
    %90 = vector.broadcast %cst_39 : f32 to vector<24x64xf32>
    %91 = arith.maximumf %90, %89 : vector<24x64xf32>
    %92 = vector.broadcast %cst_40 : f32 to vector<24x64xf32>
    %93 = arith.minimumf %92, %91 : vector<24x64xf32>
    %94 = arith.truncf %93 : vector<24x64xf32> to vector<24x64xbf16>
    %c0_41 = arith.constant 0 : index
    %c0_42 = arith.constant 0 : index
    %95 = vector.load %arg6[%c0_41, %c0_42] : memref<64x4xbf16, #tpu.memory_space<vmem>>, vector<64x4xbf16>
    %cst_43 = arith.constant dense<0.000000e+00> : vector<24x4xf32>
    %96 = tpu.matmul %94, %95, %cst_43 {dimension_numbers = #tpu.dot_dimension_numbers<[1], [0], [0], [1], [0, 0, 1, 1], [], []>} : vector<24x64xbf16>, vector<64x4xbf16>, vector<24x4xf32> -> vector<24x4xf32>
    %c0_44 = arith.constant 0 : index
    %c0_45 = arith.constant 0 : index
    %97 = vector.load %arg7[%c0_44, %c0_45] : memref<10x24xbf16, #tpu.memory_space<vmem>>, vector<10x24xbf16>
    %98 = arith.truncf %96 : vector<24x4xf32> to vector<24x4xbf16>
    %cst_46 = arith.constant dense<0.000000e+00> : vector<10x4xf32>
    %99 = tpu.matmul %97, %98, %cst_46 {dimension_numbers = #tpu.dot_dimension_numbers<[1], [0], [0], [1], [0, 0, 1, 1], [], []>} : vector<10x24xbf16>, vector<24x4xbf16>, vector<10x4xf32> -> vector<10x4xf32>
    %c0_47 = arith.constant 0 : index
    %c0_48 = arith.constant 0 : index
    %c0_49 = arith.constant 0 : index
    %100 = vector.load %arg9[%c0_47, %c0_48, %c0_49] : memref<1x10x4xf32, #tpu.memory_space<vmem>>, vector<1x10x4xf32>
    %101 = vector.shape_cast %100 : vector<1x10x4xf32> to vector<10x4xf32>
    %102 = vector.shape_cast %99 : vector<10x4xf32> to vector<1x10x4xf32>
    tpu.vector_store %arg9[%c0_47, %c0_48, %c0_49], %102 {strides = array<i32>} : memref<1x10x4xf32, #tpu.memory_space<vmem>>, vector<1x10x4xf32>,
    return
  }
  func.func @transform_0(%arg0: i32) -> (i32, i32) {
    %c0_i32 = arith.constant 0 : i32
    %c0_i32_0 = arith.constant 0 : i32
    return %c0_i32, %arg0 : i32, i32
  }
  func.func @transform_1(%arg0: i32) -> (i32, i32) {
    %c0_i32 = arith.constant 0 : i32
    %c0_i32_0 = arith.constant 0 : i32
    %c0_i32_1 = arith.constant 0 : i32
    return %c0_i32, %c0_i32_0 : i32, i32
  }
  func.func @transform_2(%arg0: i32) -> (i32, i32) {
    %c0_i32 = arith.constant 0 : i32
    %c0_i32_0 = arith.constant 0 : i32
    %c0_i32_1 = arith.constant 0 : i32
    return %c0_i32, %c0_i32_0 : i32, i32
  }
  func.func @transform_3(%arg0: i32) -> (i32, i32) {
    %c0_i32 = arith.constant 0 : i32
    %c0_i32_0 = arith.constant 0 : i32
    %c0_i32_1 = arith.constant 0 : i32
    return %c0_i32, %c0_i32_0 : i32, i32
  }
  func.func @transform_4(%arg0: i32) -> (i32, i32) {
    %c0_i32 = arith.constant 0 : i32
    %c0_i32_0 = arith.constant 0 : i32
    %c0_i32_1 = arith.constant 0 : i32
    return %c0_i32, %c0_i32_0 : i32, i32
  }
  func.func @transform_5(%arg0: i32) -> (i32, i32) {
    %c0_i32 = arith.constant 0 : i32
    %c0_i32_0 = arith.constant 0 : i32
    %c0_i32_1 = arith.constant 0 : i32
    return %c0_i32, %c0_i32_0 : i32, i32
  }
  func.func @transform_6(%arg0: i32) -> (i32, i32) {
    %c0_i32 = arith.constant 0 : i32
    %c0_i32_0 = arith.constant 0 : i32
    %c0_i32_1 = arith.constant 0 : i32
    return %c0_i32, %c0_i32_0 : i32, i32
  }
  func.func @transform_7(%arg0: i32) -> (i32, i32, i32) {
    %c0_i32 = arith.constant 0 : i32
    %c0_i32_0 = arith.constant 0 : i32
    %c0_i32_1 = arith.constant 0 : i32
    %c0_i32_2 = arith.constant 0 : i32
    return %c0_i32, %c0_i32_0, %c0_i32_1 : i32, i32, i32
  }
  func.func @transform_8(%arg0: i32) -> (i32, i32, i32) {
    %c0_i32 = arith.constant 0 : i32
    %c0_i32_0 = arith.constant 0 : i32
    %c0_i32_1 = arith.constant 0 : i32
    return %arg0, %c0_i32, %c0_i32_0 : i32, i32, i32
  }
}

</mosaic_0001>

<bundles_post_ra>
// kernel: tpu_custom_call.1
= control target key start
LH: loop header
LB: loop body
LE: loop exit
PB: predicated region body
PF: predicated region fallthrough
CT: control target
= control target key end

     0   :  { %s1098_s27 = smov 0   ;;  %s1252_s0 = inlined_call_operand.vmem [shape: f32[8,256], index: 0, kind: input, shape index: {}]   ;;  %s1253_s1 = inlined_call_operand.vmem [shape: bf16[16,24], index: 1, kind: input, shape index: {}]   ;;  %s1254_s2 = inlined_call_operand.vmem [shape: bf16[48,48], index: 2, kind: input, shape index: {}]   ;;  %s1255_s3 = inlined_call_operand.vmem [shape: bf16[24,72], index: 3, kind: input, shape index: {}]   ;;  %s1256_s4 = inlined_call_operand.vmem [shape: bf16[128,64], index: 4, kind: input, shape index: {}]   ;;  %s1257_s5 = inlined_call_operand.vmem [shape: bf16[64,4], index: 5, kind: input, shape index: {}]   ;;  %s1258_s6 = inlined_call_operand.vmem [shape: bf16[10,24], index: 6, kind: input, shape index: {}]   ;;  %s1259_s7 = inlined_call_operand.vmem [shape: f32[3,24,1], index: 7, kind: input, shape index: {}]   ;;  %s1260_s8 = inlined_call_operand.vmem [shape: f32[2,10,4], index: 8, kind: output, shape index: {}]  }
   0x1 LB: > { %s849_s28 = sadd.s32 4294967295, %s1044_s27   ;;  %p853_p0 = scmp.ge.s32.totalorder %s1044_s27, 1  ;;  %s1044_s27 = sphi %s1098_s27, %s18_s27  }
   0x2   : > { %p261_p1 = scmp.lt.s32.totalorder %s1044_s27, 3 }
   0x4   : > { %p262_p2 = pnand %p853_p0, %p261_p1 }
   0x5   : > { %p294_p3 = scmp.lt.s32.totalorder (!%p262_p2), %s849_s28, 1  ;;  %s1046_s11 = smov (!%p262_p2), 126  }
   0x6   : > { %265 = sbr.rel (%p262_p2) target bundleno = 1622 (0x656), region = 52  ;;  %s1047_s12 = smov (!%p262_p2), 127  }
   0x7   : > { %s1048_s15 = smov (!%p262_p2), 1   ;;  %s1050_s25 = smov (!%p262_p2), 64  }
   0x8   : > { %s1051_s26 = smov (!%p262_p2), 65  }
   0xb   : > { %s1264_s28 = smov (!%p294_p3, %s849_s28), 1  ;;  %vm322_vm0 = vcmask 1043456   ;;  %v966_v6 = vld [vmem:[%s1253_s1] sm:$0xff]  ;;  %vm318_vm1 = vcmask 195584   ;;  %v340_v10 = vlaneseq  ;;  %v977_v23 = vld [vmem:[%s1256_s4 + $0x38] sm:$0xff]  ;;  %v976_v26 = vld [vmem:[%s1256_s4 + $0x30] sm:$0xff] }
   0xc   : > { %s854_s29 = sshll.u32 %s1264_s28, 3  ;;  %494 = vmatpush.bf16.msra.mxu2 %v977_v23  ;;  %v975_v30 = vld [vmem:[%s1256_s4 + $0x28] sm:$0xff]  ;;  %v974_v32 = vld [vmem:[%s1256_s4 + $0x20] sm:$0xff]  ;;  %vm393_vm5 = vcmask 392192   ;;  %v973_v34 = vld [vmem:[%s1256_s4 + $0x18] sm:$0xff]  ;;  %v1049_v39 = vmov 0  }
   0xd   : > { %s297_s10 = scalar_lea.vmem %s1252_s0, %s854_s29  ;;  %v1119_v11 = vand.u32 127, %v340_v10  ;;  %v967_v33 = vld [vmem:[%s1254_s2] sm:$0xff]  ;;  %v968_v35 = vld [vmem:[%s1254_s2 + $0x8] sm:$0xff]  ;;  %v972_v36 = vld [vmem:[%s1256_s4 + $0x10] sm:$0xff]  ;;  %1016 = vset.pattern.permute.xlu0 %v1049_v39  ;;  %1017 = vset.pattern.permute.xlu1 %v1049_v39  ;;  %vm583_vm6 = vcmask 1048064   ;;  %vm1052_vm11 = vmmov 1  }
   0xe   : > { %v304_v0 = vld [vmem:[%s297_s10] sm:$0xff]  ;;  %v971_v37 = vld [vmem:[%s1256_s4 + $0x8] sm:$0xff]  ;;  %1015 = vset.pattern.permute.xlu2 %v1049_v39  ;;  %v520_v42 = vld [vmem:[%s1259_s7 + $0x10] sm:$0xff]  ;;  %vm665_vm14 = vcmask 588800   ;;  %vm736_vm15 = vcmask 523264  }
   0xf   : > { %307 = vrot.lane.b32.xlu0 %v304_v0, %s1046_s11  ;;  %v346_v12 = vand.u32 31, %v1119_v11  ;;  %v970_v38 = vld [vmem:[%s1256_s4] sm:$0xff]  ;;  %v519_v41 = vld [vmem:[%s1259_s7 + $0x8] sm:$0xff]  ;;  %v969_v49 = vld [vmem:[%s1254_s2 + $0x10] sm:$0xff] }
  0x10   : > { %495 = vmatpush.bf16.msra.mxu2 %v976_v26  ;;  %v518_v40 = vld [vmem:[%s1259_s7] sm:$0xff]  ;;  %v917_v23 = vld [vmem:[%s1259_s7 + $0x18] sm:$0xff]  ;;  %v919_v26 = vld [vmem:[%s1259_s7 + $0x28] sm:$0xff] }
  0x11   : > { %vm1122_vm2 = vcmp.eq.s32.totalorder %v346_v12, 0 }
  0x12   : > { %vm874_vm3 = vmneg %vm1122_vm2 }
  0x13   : > { %vm876_vm4 = vmpackc.low %vm874_vm3, %vm874_vm3 }
  0x14   : > { %496 = vmatpush.bf16.msra.mxu2 %v975_v30 }
  0x17   : > { %305 = vrot.lane.b32.xlu0 %v304_v0, %s1047_s12 }
  0x18   : > { %497 = vmatpush.bf16.msra.mxu2 %v974_v32 }
  0x1c   : > { %498 = vmatpush.bf16.msra.mxu2 %v973_v34 }
  0x1f   : > { %523 = vperm.xlu0 %1016, %v518_v40  }
  0x20   : > { %499 = vmatpush.bf16.msra.mxu2 %v972_v36 }
  0x24   : > { %500 = vmatpush.bf16.msra.mxu2 %v971_v37 }
  0x28   : > { %501 = vmatpush.bf16.msra.mxu2 %v970_v38 }
  0x81   : > { %v308_v1 = vpop.permute.xlu0 %307 }
  0x82   : > { %v310_v2 = vpack.c.bf16 %v308_v1, %v308_v1 }
  0x84   : > { %v324_v3 = vsel %vm322_vm0, %v310_v2, 0 }
  0x85   : > { %332 = vmatpush.bf16.msra.mxu0 %v324_v3 }
  0x89   : > { %v306_v4 = vpop.permute.xlu0 %305 }
  0x8a   : > { %v309_v5 = vpack.c.bf16 %v306_v4, %v304_v0 }
  0x8c   : > { %333 = vmatpush.bf16.msra.mxu0 %v309_v5 }
  0x8f   : > { %861 = vmatmul.msk.bf16.vlgmr.msra.gmra.mxu0 %vm318_vm1, %v966_v6 }
  0x91   : > { %v524_v51 = vpop.permute.xlu0 %523 }
 0x10c   : > { %v335_v7 = vpop.f32.mrf.mxu0 }
 0x114   : > { %v337_v8 = vpop.f32.mrf.mxu0 }
 0x115   : > { %v1000_v9 = vpack.i.bf16 %v337_v8, %v335_v7 }
 0x117   : > { %1001 = vrot.lane.b32.xlu1 %v1000_v9, %s1048_s15 }
 0x189   : > { %v1002_v13 = vpop.permute.xlu1 %1001 }
 0x18a   : > { %v1004_v15 = vunpack.i.h.bf16 %v1002_v13  ;;  %v1003_v16 = vunpack.i.l.bf16 %v1002_v13 }
 0x18c   : > { %v877_v17 = vpack.c.bf16 %v1004_v15, %v1003_v16  ;;  %v359_v18 = vsel %vm1122_vm2, 0.0, %v1003_v16  ;;  %v360_v19 = vsel %vm1122_vm2, 0.0, %v1004_v15  ;;  %vm792_vm2 = vcmask 25600  }
 0x18d   : > { %v1010_v20 = vpack.i.bf16 %v360_v19, %v359_v18 }
 0x18f   : > { %1011 = vrot.lane.b32.xlu2 %v1010_v20, %s1047_s12  ;;  %1006 = vrot.lane.b32.xlu1 %v1010_v20, %s1046_s11 }
 0x197   : > { %528 = vperm.xlu1 %1017, %v519_v41   ;;  %533 = vperm.xlu2 %1015, %v520_v42  }
 0x1e9   : > { %v1012_v21 = vpop.permute.xlu2 %1011 }
 0x1ea   : > { %v1014_v27 = vunpack.i.h.bf16 %v1012_v21  ;;  %v1013_v28 = vunpack.i.l.bf16 %v1012_v21 }
 0x1ec   : > { %v370_v31 = vpack.c.bf16 %v1014_v27, %v1013_v28  ;;  %v916_v27 = vld [vmem:[%s1259_s7 + $0x40] sm:$0xff] }
 0x1ed   : > { %v918_v28 = vld [vmem:[%s1259_s7 + $0x20] sm:$0xff] }
 0x1f1   : > { %v534_v60 = vpop.permute.xlu2 %533 }
 0x201   : > { %v1007_v22 = vpop.permute.xlu1 %1006 }
 0x202   : > { %v1009_v24 = vunpack.i.h.bf16 %v1007_v22  ;;  %v1008_v25 = vunpack.i.l.bf16 %v1007_v22 }
 0x204   : > { %v371_v29 = vpack.c.bf16 %v1009_v24, %v1008_v25  ;;  %v915_v24 = vld [vmem:[%s1259_s7 + $0x38] sm:$0xff]  ;;  %v914_v25 = vld [vmem:[%s1259_s7 + $0x30] sm:$0xff] }
 0x206   : > { %408 = vmatpush.bf16.msra.mxu1 %v371_v29  ;;  %v574_v29 = vand.u32 15, %v1119_v11 }
 0x208   : > { %vm617_vm7 = vcmp.ge.s32.totalorder %v574_v29, 14  ;;  %vm984_vm10 = vcmp.ne.s32.totalorder %v574_v29, 0 }
 0x209   : > { %v529_v53 = vpop.permute.xlu1 %528  ;;  %vm924_vm8 = vmneg %vm617_vm7 }
 0x20a   : > { %409 = vmatpush.bf16.msra.mxu1 %v370_v31  ;;  %vm926_vm9 = vmpackc.low %vm924_vm8, %vm924_vm8 }
 0x20b   : > { %vm930_vm12 = vmpackc.low %vm1052_vm11, %vm984_vm10 }
 0x20c   : > { %vm935_vm13 = vmpackc.low %vm984_vm10, %vm984_vm10 }
 0x20e   : > { %878 = vmatpush.bf16.msk.msra.mxu1 %vm876_vm4, %v877_v17 }
 0x211   : > { %879 = vmatmul.msk.bf16.vlgmr.msra.gmra.mxu1 %vm393_vm5, %v967_v33 }
 0x221   : > { %880 = vmatmul.msk.bf16.gmra.mxu1 %vm393_vm5, %v968_v35 }
 0x231   : > { %881 = vmatmul.msk.bf16.gmra.mxu1 %vm393_vm5, %v969_v49  ;;  %v981_v49 = vld [vmem:[%s1257_s5 + $0x10] sm:$0xff] }
 0x28e   : > { %v412_v43 = vpop.f32.mrf.mxu1 }
 0x296   : > { %v414_v44 = vpop.f32.mrf.mxu1 }
 0x297   : > { %v427_v45 = vpack.c.bf16 %v414_v44, %v412_v43  ;;  %v978_v44 = vld [vmem:[%s1255_s3] sm:$0xff] }
 0x299   : > { %502 = vmatmul.bf16.vlgmr.msra.gmra.mxu2 %v427_v45  ;;  %v637_v45 = vld [vmem:[%s1255_s3 + $0x8] sm:$0xf] }
 0x29e   : > { %v417_v46 = vpop.f32.mrf.mxu1 }
 0x2a6   : > { %v419_v47 = vpop.f32.mrf.mxu1 }
 0x2a7   : > { %v428_v48 = vpack.c.bf16 %v419_v47, %v417_v46  ;;  %v662_v46 = vunpack.c.l.b16 %v637_v45 }
 0x2a9   : > { %507 = vmatmul.bf16.gmra.mxu2 %v428_v48  ;;  %v664_v47 = vpack.c.b16 %v662_v46, %v662_v46  ;;  %v982_v48 = vld [vmem:[%s1257_s5 + $0x18] sm:$0xff] }
 0x2aa   : > { %747 = vmatpush.bf16.msrb.mxu0 %v982_v48 }
 0x2ae   : > { %v422_v10 = vpop.f32.mrf.mxu1  ;;  %748 = vmatpush.bf16.msrb.mxu0 %v981_v49 }
 0x2b6   : > { %v424_v12 = vpop.f32.mrf.mxu1 }
 0x2b7   : > { %v429_v13 = vpack.c.bf16 %v424_v12, %v422_v10 }
 0x2b9   : > { %512 = vmatmul.bf16.gmra.mxu2 %v429_v13 }
 0x31c   : > { %v503_v50 = vpop.f32.mrf.mxu2 }
 0x31d   : > { %v536_v52 = vadd.f32 %v524_v51, %v503_v50  ;;  %v980_v50 = vld [vmem:[%s1257_s5 + $0x8] sm:$0xff]  ;;  %v979_v51 = vld [vmem:[%s1257_s5] sm:$0xff] }
 0x31e   : > { %749 = vmatpush.bf16.msrb.mxu0 %v980_v50 }
 0x31f   : > { %v539_v55 = vmax.f32 %v536_v52, 0.0 }
 0x321   : > { %v1179_v58 = vmin.f32 %v539_v55, 20.0 }
 0x322   : > { %750 = vmatpush.bf16.msrb.mxu0 %v979_v51 }
 0x324   : > { %v505_v54 = vpop.f32.mrf.mxu2 }
 0x325   : > { %v537_v56 = vadd.f32 %v529_v53, %v505_v54 }
 0x327   : > { %v540_v57 = vmax.f32 %v537_v56, 0.0 }
 0x329   : > { %v1181_v59 = vmin.f32 %v540_v57, 20.0 }
 0x32b   : > { %v1018_v61 = vpack.i.bf16 %v1181_v59, %v1179_v58 }
 0x32c   : > { %v508_v62 = vpop.f32.mrf.mxu2 }
 0x32d   : > { %v538_v63 = vadd.f32 %v534_v60, %v508_v62  ;;  %1019 = vrot.lane.b32.xlu1 %v1018_v61, %s1050_s25 }
 0x32f   : > { %v541_v0 = vmax.f32 %v538_v63, 0.0 }
 0x331   : > { %v544_v1 = vmin.f32 %v541_v0, 20.0 }
 0x333   : > { %590 = vrot.lane.b32.xlu2 %v544_v1, %s1050_s25  ;;  %v632_v38 = vpack.c.bf16 %v544_v1, %v1181_v59 }
 0x334   : > { %v510_v52 = vpop.f32.mrf.mxu2 }
 0x33c   : > { %v513_v56 = vpop.f32.mrf.mxu2 }
 0x38d   : > { %v591_v2 = vpop.permute.xlu2 %590 }
 0x38e   : > { %v592_v3 = vsel %vm583_vm6, %v591_v2, %v544_v1 }
 0x38f   : > { %597 = vrot.lane.b32.xlu2 %v592_v3, %s1050_s25 }
 0x39f   : > { %v1020_v4 = vpop.permute.xlu1 %1019 }
 0x3a0   : > { %v1022_v5 = vunpack.i.h.bf16 %v1020_v4  ;;  %v1021_v6 = vunpack.i.l.bf16 %v1020_v4 }
 0x3a2   : > { %v586_v7 = vsel %vm583_vm6, %v1021_v6, %v1179_v58  ;;  %v589_v8 = vsel %vm583_vm6, %v1022_v5, %v1181_v59  ;;  %v515_v5 = vpop.f32.mrf.mxu2 }
 0x3a3   : > { %v1023_v9 = vpack.i.bf16 %v589_v8, %v586_v7 }
 0x3a5   : > { %1024 = vrot.lane.b32.xlu0 %v1023_v9, %s1050_s25 }
 0x3e9   : > { %v598_v14 = vpop.permute.xlu2 %597 }
 0x3ea   : > { %v601_v15 = vsel %vm583_vm6, %v598_v14, %v544_v1 }
 0x3eb   : > { %622 = vrot.lane.b32.xlu1 %v601_v15, %s1047_s12 }
 0x417   : > { %v1025_v16 = vpop.permute.xlu0 %1024 }
 0x418   : > { %v1027_v17 = vunpack.i.h.bf16 %v1025_v16  ;;  %v1026_v18 = vunpack.i.l.bf16 %v1025_v16 }
 0x41a   : > { %v600_v19 = vsel %vm583_vm6, %v1027_v17, %v1181_v59  ;;  %v599_v20 = vsel %vm583_vm6, %v1026_v18, %v1179_v58 }
 0x41b   : > { %607 = vrot.lane.b32.xlu1 %v600_v19, %s1051_s26  ;;  %v1028_v21 = vpack.i.bf16 %v600_v19, %v599_v20  ;;  %v1033_v22 = vpack.i.bf16 %v599_v20, %v601_v15 }
 0x41d   : > { %1034 = vrot.lane.b32.xlu0 %v1033_v22, %s1051_s26  ;;  %1029 = vrot.lane.b32.xlu2 %v1028_v21, %s1047_s12  ;;  %s965_s12 = sshll.u32 %s1264_s28, 4 }
 0x41e   : > { %s302_s18 = scalar_lea.vmem %s1260_s8, %s965_s12 }
 0x423   : > { %644 = vperm.xlu1 %1017, %v917_v23  }
 0x425   : > { %556 = vperm.xlu0 %1016, %v915_v24   ;;  %551 = vperm.xlu2 %1015, %v914_v25  }
 0x42b   : > { %654 = vperm.xlu1 %1017, %v919_v26  }
 0x42d   : > { %561 = vperm.xlu0 %1016, %v916_v27   ;;  %649 = vperm.xlu2 %1015, %v918_v28   ;;  %v960_v27 = vld [vmem:[%s1258_s6] sm:$0xf]  ;;  %v983_v28 = vld [vmem:[%s1258_s6] sm:$0x10] }
 0x45d   : > { %v623_v30 = vpop.permute.xlu1 %622 }
 0x45e   : > { %v629_v31 = vsel %vm617_vm7, 0.0, %v623_v30  ;;  %v961_v30 = vor.u32 %v983_v28, %v960_v27 }
 0x45f   : > { %v634_v32 = vpack.c.bf16 %v629_v31, %v629_v31 }
 0x461   : > { %v673_v33 = vsel %vm322_vm0, %v634_v32, 0 }
 0x462   : > { %678 = vmatpush.bf16.msra.mxu3 %v673_v33 }
 0x477   : > { %v1030_v34 = vpop.permute.xlu2 %1029 }
 0x478   : > { %v1032_v35 = vunpack.i.h.bf16 %v1030_v34  ;;  %v1031_v36 = vunpack.i.l.bf16 %v1030_v34 }
 0x47a   : > { %v927_v37 = vpack.c.bf16 %v1032_v35, %v1031_v36 }
 0x47c   : > { %928 = vmatpush.bf16.msk.msra.mxu3 %vm926_vm9, %v927_v37 }
 0x47f   : > { %v552_v53 = vpop.permute.xlu2 %551 }
 0x480   : > { %680 = vmatpush.bf16.msra.mxu3 %v632_v38  ;;  %v564_v55 = vadd.f32 %v552_v53, %v510_v52 }
 0x482   : > { %v567_v60 = vmax.f32 %v564_v55, 0.0 }
 0x487   : > { %v650_v63 = vpop.permute.xlu2 %649 }
 0x48d   : > { %v608_v42 = vpop.permute.xlu1 %607 }
 0x48f   : > { %v1035_v39 = vpop.permute.xlu0 %1034 }
 0x490   : > { %v1036_v11 = vunpack.i.l.bf16 %v1035_v39  ;;  %v1037_v40 = vunpack.i.h.bf16 %v1035_v39 }
 0x492   : > { %v931_v41 = vpack.c.bf16 %v1179_v58, %v1036_v11  ;;  %v936_v43 = vpack.c.bf16 %v608_v42, %v1037_v40 }
 0x494   : > { %932 = vmatpush.bf16.msk.msra.mxu3 %vm930_vm12, %v931_v41 }
 0x495   : > { %v645_v57 = vpop.permute.xlu1 %644 }
 0x497   : > { %v557_v58 = vpop.permute.xlu0 %556 }
 0x498   : > { %937 = vmatpush.bf16.msk.msra.mxu3 %vm935_vm13, %v936_v43  ;;  %v565_v61 = vadd.f32 %v557_v58, %v513_v56 }
 0x49a   : > { %v568_v1 = vmax.f32 %v565_v61, 0.0 }
 0x49b   : > { %938 = vmatmul.msk.bf16.vlgmr.msra.gmra.mxu3 %vm665_vm14, %v978_v44 }
 0x49d   : > { %v655_v12 = vpop.permute.xlu1 %654 }
 0x49f   : > { %v562_v6 = vpop.permute.xlu0 %561 }
 0x4a0   : > { %v566_v8 = vadd.f32 %v562_v6, %v515_v5 }
 0x4a2   : > { %v569_v16 = vmax.f32 %v566_v8, 0.0 }
 0x4ab   : > { %939 = vmatmul.msk.bf16.gmra.mxu3 %vm665_vm14, %v664_v47 }
 0x51e   : > { %v684_v54 = vpop.f32.mrf.mxu3 }
 0x51f   : > { %v685_v59 = vadd.f32 %v684_v54, %v645_v57 }
 0x521   : > { %v693_v62 = vadd.f32 %v685_v59, %v567_v60 }
 0x523   : > { %v696_v3 = vmax.f32 %v693_v62, 0.0 }
 0x525   : > { %v699_v9 = vmin.f32 %v696_v3, 20.0 }
 0x526   : > { %v686_v0 = vpop.f32.mrf.mxu3 }
 0x527   : > { %v687_v2 = vadd.f32 %v686_v0, %v650_v63 }
 0x529   : > { %v694_v4 = vadd.f32 %v687_v2, %v568_v1 }
 0x52b   : > { %v697_v7 = vmax.f32 %v694_v4, 0.0 }
 0x52d   : > { %v700_v10 = vmin.f32 %v697_v7, 20.0 }
 0x52e   : > { %v689_v13 = vpop.f32.mrf.mxu3 }
 0x52f   : > { %v702_v14 = vpack.c.bf16 %v700_v10, %v699_v9  ;;  %v690_v15 = vadd.f32 %v689_v13, %v655_v12 }
 0x531   : > { %956 = vmatmul.msk.bf16.vlgmr.msrb.gmra.mxu0 %vm736_vm15, %v702_v14  ;;  %v695_v17 = vadd.f32 %v690_v15, %v569_v16 }
 0x533   : > { %v698_v19 = vmax.f32 %v695_v17, 0.0 }
 0x535   : > { %v701_v20 = vmin.f32 %v698_v19, 20.0 }
 0x536   : > { %v691_v18 = vpop.f32.mrf.mxu3 }
 0x537   : > { %v703_v21 = vpack.c.bf16 %v701_v20, %v701_v20 }
 0x541   : > { %957 = vmatmul.msk.bf16.gmra.mxu0 %vm736_vm15, %v703_v21 }
 0x5ae   : > { %v752_v22 = vpop.f32.mrf.mxu0 }
 0x5b6   : > { %v754_v23 = vpop.f32.mrf.mxu0 }
 0x5b7   : > { %v763_v29 = vpack.c.bf16 %v754_v23, %v752_v22 }
 0x5be   : > { %v757_v24 = vpop.f32.mrf.mxu0 }
 0x5bf   : > { %v764_v25 = vpack.c.bf16 %v757_v24, %v757_v24 }
 0x5c1   : > { %v774_v26 = vsel %vm322_vm0, %v764_v25, 0  ;;  %vm790_vm0 = vcmask 31744  }
 0x5c2   : > { %782 = vmatpush.bf16.msrb.mxu3 %v774_v26 }
 0x5c6   : > { %v759_v31 = vpop.f32.mrf.mxu0  ;;  %783 = vmatpush.bf16.msrb.mxu3 %v763_v29 }
 0x5c9   : > { %962 = vmatmul.msk.bf16.vlgmr.msrb.gmra.mxu3 %vm318_vm1, %v961_v30 }
 0x64c   : > { %v785_v32 = vpop.f32.mrf.mxu3 }
 0x64d   : > { %791 = vst.msk [vmem:[%s302_s18] sm:$0xff] %vm790_vm0, %v785_v32 }
 0x654   : > { %v787_v33 = vpop.f32.mrf.mxu3 }
 0x655   : > { %793 = vst.msk [vmem:[%s302_s18 + $0x8] sm:$0x3] %vm792_vm2, %v787_v33 }
 0x656 PF: > { %s18_s27 = sadd.s32 1, %s1044_s27  }
 0x657   : > { %p15_p4 = scmp.ge.s32.totalorder %s18_s27, 4  }
 0x659   :  { %17 = sbr.rel (!%p15_p4) target bundleno = 1 (0x1), region = 84 }

</bundles_post_ra>
